<compile_context>
chip_gen: v7x
topology: tpu7x:2x2x1
jax: 0.10.0
libtpu: 0.0.40
codegen_flags: <defaults>
</compile_context>

<pallas_src>
import jax
import jax.numpy as jnp
from jax import lax
from jax.experimental import pallas as pl
from jax.experimental.pallas import tpu as pltpu

LANE = 128
SUBLANE = 8
H1, H2 = 64, 32  # hidden sizes fixed by Model4


def _round_up(n, m):
    return ((n + m - 1) // m) * m


def _vmem_capacity_bytes():
    try:
        return int(pltpu.get_tpu_info().vmem_capacity_bytes)
    except Exception:
        return 64 << 20  # conservative fallback (v7x per-TC VMEM)


def mlp_kernel(x_ref, w1_ref, b1_ref, w2_ref, b2_ref, w3t_ref, b3t_ref, o_ref):
    wdt = w1_ref.dtype
    # fc1 + ReLU: cast x to the MXU dtype in-register (no wrapper-side astype HBM pass),
    # accumulate in f32; bias-add / ReLU stay f32 (v5e-friendly).
    h1 = jnp.dot(x_ref[...].astype(wdt), w1_ref[...],
                 preferred_element_type=jnp.float32)
    h1 = jnp.maximum(h1 + b1_ref[...], 0.0)
    # fc2 + ReLU: cast immediately before the dot.
    h2 = jnp.dot(h1.astype(wdt), w2_ref[...],
                 preferred_element_type=jnp.float32)
    h2 = jnp.maximum(h2 + b2_ref[...], 0.0)
    # fc3 computed transposed: out_t[c, b] = sum_k w3t[c, k] * h2[b, k]
    # -> output block (c_pad, tb) has batch on the lane axis: lane-dense store that is
    #    only c_pad (8) sublanes wide instead of 128 padded f32 lanes per row.
    out_t = lax.dot_general(
        w3t_ref[...], h2,
        dimension_numbers=(((1,), (1,)), ((), ())),
        preferred_element_type=jnp.float32)
    o_ref[...] = (out_t + b3t_ref[...]).astype(o_ref.dtype)


def model4_forward(x, params, *, tile_b=2048, use_bf16=True, target_steps=4):
    """Model4 forward: ReLU(ReLU(x@W1+b1)@W2+b2)@W3+b3.

    x: [B, input_dim] (f32 or bf16; bf16 halves the input DMA stream).
    params: w1 (input_dim,64), b1 (1,64), w2 (64,32), b2 (1,32),
            w3 (32,num_classes), b3 (1,num_classes). Returns [B, num_classes] f32.
    """
    B, input_dim = x.shape
    num_classes = params["w3"].shape[1]
    c_pad = _round_up(num_classes, SUBLANE)

    w_dtype = jnp.bfloat16 if use_bf16 else jnp.float32
    w1 = params["w1"].astype(w_dtype)
    w2 = params["w2"].astype(w_dtype)
    b1 = params["b1"].astype(jnp.float32)
    b2 = params["b2"].astype(jnp.float32)
    # fc3 stored transposed + zero-padded to c_pad output rows; kept f32 (tiny: c_pad x 32).
    w3t = jnp.zeros((c_pad, H2), jnp.float32).at[:num_classes, :].set(params["w3"].T)
    b3t = jnp.zeros((c_pad, 1), jnp.float32).at[:num_classes, :].set(params["b3"].T)

    # ---- tile sizing against the per-generation VMEM budget --------------------------
    budget = (_vmem_capacity_bytes() * 3) // 4          # leave headroom for Mosaic scratch
    x_item = jnp.dtype(x.dtype).itemsize
    w_item = jnp.dtype(w_dtype).itemsize
    # per batch-row: double-buffered x tile + double-buffered out tile (f32) + h1/h2 temps
    per_row = 2 * input_dim * x_item + 2 * c_pad * 4 + (H1 + H2) * 4
    # resident weights/biases: Pallas still double-buffers constant-index blocks
    resident = 2 * ((input_dim * H1 + H1 * H2) * w_item
                    + (c_pad * H2 + c_pad) * 4
                    + 2 * SUBLANE * LANE * 4)           # b1/b2 pad to (8,128) f32 tiles
    tb_budget = max((budget - resident - (2 << 20)) // per_row, LANE)
    tb_budget = (tb_budget // LANE) * LANE
    # ensure >= target_steps grid steps when the batch allows (v7x dual-TC + pipelining);
    # tb must be a multiple of 128 (batch sits on the lane axis of the output block).
    tb_steps = _round_up(max(pl.cdiv(B, max(target_steps, 1)), 1), LANE)
    tb = int(max(LANE, min(_round_up(tile_b, LANE), tb_budget, tb_steps)))
    grid = (pl.cdiv(B, tb),)   # no wrapper-side pad: partial last tile is masked on store

    est = tb * per_row + resident + (2 << 20)
    vmem_limit = int(min(max(est, 16 << 20), budget))

    const = lambda i: (0, 0)   # same block every step -> stays resident in VMEM
    out_t = pl.pallas_call(
        mlp_kernel,
        out_shape=jax.ShapeDtypeStruct((c_pad, B), jnp.float32),
        grid=grid,
        in_specs=[
            pl.BlockSpec((tb, input_dim), lambda i: (i, 0)),   # x, batch-tiled
            pl.BlockSpec((input_dim, H1), const),              # w1
            pl.BlockSpec((1, H1), const),                      # b1
            pl.BlockSpec((H1, H2), const),                     # w2
            pl.BlockSpec((1, H2), const),                      # b2
            pl.BlockSpec((c_pad, H2), const),                  # w3^T (row-padded)
            pl.BlockSpec((c_pad, 1), const),                   # b3^T
        ],
        out_specs=pl.BlockSpec((c_pad, tb), lambda i: (0, i)), # transposed, lane-dense
        compiler_params=pltpu.CompilerParams(
            dimension_semantics=("parallel",),   # v7x: shard batch grid across both TCs
            vmem_limit_bytes=vmem_limit,
        ),
    )(x, w1, b1, w2, b2, w3t, b3t)

    # Tiny readback: c_pad (=8) f32 rows instead of the old 128-lane padded [B,128] slab.
    return out_t[:num_classes, :].T


def init_params(key, input_dim, num_classes):
    """Deterministic init mimicking nn.Linear's uniform(-1/sqrt(fan_in), 1/sqrt(fan_in))."""
    def linear(key, fan_in, fan_out):
        kw, kb = jax.random.split(key)
        bound = 1.0 / jnp.sqrt(fan_in)
        w = jax.random.uniform(kw, (fan_in, fan_out), jnp.float32, -bound, bound)
        b = jax.random.uniform(kb, (1, fan_out), jnp.float32, -bound, bound)
        return w, b

    k1, k2, k3 = jax.random.split(key, 3)
    w1, b1 = linear(k1, input_dim, H1)
    w2, b2 = linear(k2, H1, H2)
    w3, b3 = linear(k3, H2, num_classes)
    return {"w1": w1, "b1": b1, "w2": w2, "b2": b2, "w3": w3, "b3": b3}


def model4_reference(x, p):
    h1 = jnp.maximum(x @ p["w1"] + p["b1"], 0.0)
    h2 = jnp.maximum(h1 @ p["w2"] + p["b2"], 0.0)
    return h2 @ p["w3"] + p["b3"]


if __name__ == "__main__":
    key = jax.random.PRNGKey(0)
    kx, kp, kx2 = jax.random.split(key, 3)

    input_dim = 32
    num_classes = 5   # not a multiple of 8 -> exercises fc3 row padding + output slice
    batch = 37        # not a multiple of 8/128 -> exercises the masked partial tile

    params = init_params(kp, input_dim, num_classes)
    x = jax.random.normal(kx, (batch, input_dim), jnp.float32)
    ref = model4_reference(x, params)

    # 1) f32 path, single (partial) tile -- strict validation.
    out_f32 = jax.block_until_ready(model4_forward(x, params, use_bf16=False))
    assert out_f32.shape == (batch, num_classes)
    assert jnp.allclose(out_f32, ref, atol=1e-5, rtol=1e-5), "f32 path mismatch vs reference"

    # 2) default bf16-operand path (f32 accumulation, f32 bias/ReLU/output).
    out_bf16 = jax.block_until_ready(model4_forward(x, params))
    assert out_bf16.shape == (batch, num_classes)
    assert jnp.allclose(out_bf16, ref, atol=2e-1, rtol=5e-2), "bf16 path diverged too far"

    # 3) multi-step grid with a partial last tile (pipelining + store masking).
    batch2 = 300
    x2 = jax.random.normal(kx2, (batch2, input_dim), jnp.float32)
    ref2 = model4_reference(x2, params)
    out2 = jax.block_until_ready(model4_forward(x2, params, tile_b=128, use_bf16=False))
    assert out2.shape == (batch2, num_classes)
    assert jnp.allclose(out2, ref2, atol=1e-5, rtol=1e-5), "tiled f32 path mismatch vs reference"

    print("KERNEL_OK")
</pallas_src>

<mosaic_0001>
module attributes {stable_mosaic.version = 11 : i64} {
  func.func @mlp_kernel(%arg0: i32, %arg1: memref<128x32xf32, #tpu.memory_space<vmem>>, %arg2: memref<32x64xf32, #tpu.memory_space<vmem>>, %arg3: memref<1x64xf32, #tpu.memory_space<vmem>>, %arg4: memref<64x32xf32, #tpu.memory_space<vmem>>, %arg5: memref<1x32xf32, #tpu.memory_space<vmem>>, %arg6: memref<8x32xf32, #tpu.memory_space<vmem>>, %arg7: memref<8x1xf32, #tpu.memory_space<vmem>>, %arg8: memref<8x128xf32, #tpu.memory_space<vmem>>) attributes {dimension_semantics = [#tpu.dimension_semantics<parallel>], iteration_bounds = array<i64: 1>, scalar_prefetch = 0 : i64, scratch_operands = 0 : i64, tpu.core_type = #tpu.core_type<tc>, window_params = [{transform_indices = @transform_0, window_bounds = array<i64: 128, 32>}, {pipeline_mode = #tpu.pipeline_mode<synchronous>, transform_indices = @transform_1, window_bounds = array<i64: 32, 64>}, {pipeline_mode = #tpu.pipeline_mode<synchronous>, transform_indices = @transform_2, window_bounds = array<i64: 1, 64>}, {pipeline_mode = #tpu.pipeline_mode<synchronous>, transform_indices = @transform_3, window_bounds = array<i64: 64, 32>}, {pipeline_mode = #tpu.pipeline_mode<synchronous>, transform_indices = @transform_4, window_bounds = array<i64: 1, 32>}, {pipeline_mode = #tpu.pipeline_mode<synchronous>, transform_indices = @transform_5, window_bounds = array<i64: 8, 32>}, {pipeline_mode = #tpu.pipeline_mode<synchronous>, transform_indices = @transform_6, window_bounds = array<i64: 8, 1>}, {transform_indices = @transform_7, window_bounds = array<i64: 8, 128>}]} {
    %c0 = arith.constant 0 : index
    %c0_0 = arith.constant 0 : index
    %0 = vector.load %arg1[%c0, %c0_0] : memref<128x32xf32, #tpu.memory_space<vmem>>, vector<128x32xf32>
    %c0_1 = arith.constant 0 : index
    %c0_2 = arith.constant 0 : index
    %1 = vector.load %arg2[%c0_1, %c0_2] : memref<32x64xf32, #tpu.memory_space<vmem>>, vector<32x64xf32>
    %cst = arith.constant dense<0.000000e+00> : vector<128x64xf32>
    %2 = tpu.matmul %0, %1, %cst {dimension_numbers = #tpu.dot_dimension_numbers<[1], [0], [0], [1], [0, 0, 1, 1], [], []>} : vector<128x32xf32>, vector<32x64xf32>, vector<128x64xf32> -> vector<128x64xf32>
    %c0_3 = arith.constant 0 : index
    %c0_4 = arith.constant 0 : index
    %3 = vector.load %arg3[%c0_3, %c0_4] : memref<1x64xf32, #tpu.memory_space<vmem>>, vector<1x64xf32>
    %4 = vector.broadcast %3 : vector<1x64xf32> to vector<128x64xf32>
    %5 = arith.addf %2, %4 : vector<128x64xf32>
    %cst_5 = arith.constant 0.000000e+00 : f32
    %6 = vector.broadcast %cst_5 : f32 to vector<128x64xf32>
    %7 = arith.maximumf %5, %6 : vector<128x64xf32>
    %c0_6 = arith.constant 0 : index
    %c0_7 = arith.constant 0 : index
    %8 = vector.load %arg4[%c0_6, %c0_7] : memref<64x32xf32, #tpu.memory_space<vmem>>, vector<64x32xf32>
    %cst_8 = arith.constant dense<0.000000e+00> : vector<128x32xf32>
    %9 = tpu.matmul %7, %8, %cst_8 {dimension_numbers = #tpu.dot_dimension_numbers<[1], [0], [0], [1], [0, 0, 1, 1], [], []>} : vector<128x64xf32>, vector<64x32xf32>, vector<128x32xf32> -> vector<128x32xf32>
    %c0_9 = arith.constant 0 : index
    %c0_10 = arith.constant 0 : index
    %10 = vector.load %arg5[%c0_9, %c0_10] : memref<1x32xf32, #tpu.memory_space<vmem>>, vector<1x32xf32>
    %11 = vector.broadcast %10 : vector<1x32xf32> to vector<128x32xf32>
    %12 = arith.addf %9, %11 : vector<128x32xf32>
    %cst_11 = arith.constant 0.000000e+00 : f32
    %13 = vector.broadcast %cst_11 : f32 to vector<128x32xf32>
    %14 = arith.maximumf %12, %13 : vector<128x32xf32>
    %c0_12 = arith.constant 0 : index
    %c0_13 = arith.constant 0 : index
    %15 = vector.load %arg6[%c0_12, %c0_13] : memref<8x32xf32, #tpu.memory_space<vmem>>, vector<8x32xf32>
    %cst_14 = arith.constant dense<0.000000e+00> : vector<8x128xf32>
    %16 = tpu.matmul %15, %14, %cst_14 {dimension_numbers = #tpu.dot_dimension_numbers<[1], [1], [0], [0], [0, 0, 1, 0], [], []>} : vector<8x32xf32>, vector<128x32xf32>, vector<8x128xf32> -> vector<8x128xf32>
    %c0_15 = arith.constant 0 : index
    %c0_16 = arith.constant 0 : index
    %17 = vector.load %arg7[%c0_15, %c0_16] : memref<8x1xf32, #tpu.memory_space<vmem>>, vector<8x1xf32>
    %18 = vector.broadcast %17 : vector<8x1xf32> to vector<8x128xf32>
    %19 = arith.addf %16, %18 : vector<8x128xf32>
    %c0_17 = arith.constant 0 : index
    %c0_18 = arith.constant 0 : index
    %20 = vector.load %arg8[%c0_17, %c0_18] : memref<8x128xf32, #tpu.memory_space<vmem>>, vector<8x128xf32>
    tpu.vector_store %arg8[%c0_17, %c0_18], %19 {strides = array<i32>} : memref<8x128xf32, #tpu.memory_space<vmem>>, vector<8x128xf32>,
    return
  }
  func.func @transform_0(%arg0: i32) -> (i32, i32) {
    %c0_i32 = arith.constant 0 : i32
    %c0_i32_0 = arith.constant 0 : i32
    return %arg0, %c0_i32 : i32, i32
  }
  func.func @transform_1(%arg0: i32) -> (i32, i32) {
    %c0_i32 = arith.constant 0 : i32
    %c0_i32_0 = arith.constant 0 : i32
    %c0_i32_1 = arith.constant 0 : i32
    return %c0_i32, %c0_i32_0 : i32, i32
  }
  func.func @transform_2(%arg0: i32) -> (i32, i32) {
    %c0_i32 = arith.constant 0 : i32
    %c0_i32_0 = arith.constant 0 : i32
    %c0_i32_1 = arith.constant 0 : i32
    return %c0_i32, %c0_i32_0 : i32, i32
  }
  func.func @transform_3(%arg0: i32) -> (i32, i32) {
    %c0_i32 = arith.constant 0 : i32
    %c0_i32_0 = arith.constant 0 : i32
    %c0_i32_1 = arith.constant 0 : i32
    return %c0_i32, %c0_i32_0 : i32, i32
  }
  func.func @transform_4(%arg0: i32) -> (i32, i32) {
    %c0_i32 = arith.constant 0 : i32
    %c0_i32_0 = arith.constant 0 : i32
    %c0_i32_1 = arith.constant 0 : i32
    return %c0_i32, %c0_i32_0 : i32, i32
  }
  func.func @transform_5(%arg0: i32) -> (i32, i32) {
    %c0_i32 = arith.constant 0 : i32
    %c0_i32_0 = arith.constant 0 : i32
    %c0_i32_1 = arith.constant 0 : i32
    return %c0_i32, %c0_i32_0 : i32, i32
  }
  func.func @transform_6(%arg0: i32) -> (i32, i32) {
    %c0_i32 = arith.constant 0 : i32
    %c0_i32_0 = arith.constant 0 : i32
    %c0_i32_1 = arith.constant 0 : i32
    return %c0_i32, %c0_i32_0 : i32, i32
  }
  func.func @transform_7(%arg0: i32) -> (i32, i32) {
    %c0_i32 = arith.constant 0 : i32
    %c0_i32_0 = arith.constant 0 : i32
    return %c0_i32, %arg0 : i32, i32
  }
}

</mosaic_0001>

<bundles_post_ra>
// kernel: tpu_custom_call.1
= control target key start
LH: loop header
LB: loop body
LE: loop exit
PB: predicated region body
PF: predicated region fallthrough
CT: control target
= control target key end

     0   :  { %vm54_vm0 = vcmask 261120   ;;  %s1153_s0 = inlined_call_operand.vmem [shape: f32[37,32], index: 0, kind: input, shape index: {}]   ;;  %s1154_s1 = inlined_call_operand.vmem [shape: f32[32,64], index: 1, kind: input, shape index: {}]   ;;  %s1155_s2 = inlined_call_operand.vmem [shape: f32[1,64], index: 2, kind: input, shape index: {}]   ;;  %s1156_s3 = inlined_call_operand.vmem [shape: f32[64,32], index: 3, kind: input, shape index: {}]   ;;  %s1157_s4 = inlined_call_operand.vmem [shape: f32[1,32], index: 4, kind: input, shape index: {}]   ;;  %s1158_s5 = inlined_call_operand.vmem [shape: f32[8,32], index: 5, kind: input, shape index: {}]   ;;  %s1159_s6 = inlined_call_operand.vmem [shape: f32[8,1], index: 6, kind: input, shape index: {}]   ;;  %s1160_s7 = inlined_call_operand.hbm [shape: f32[8,37], index: 7, kind: output, shape index: {}]  }
   0x1   :  { %v43_v0 = vld [vmem:[%s1154_s1] sm:$0xff]  ;;  %v44_v1 = vld [vmem:[%s1154_s1 + $0x8] sm:$0xff]  ;;  %v45_v2 = vld [vmem:[%s1154_s1 + $0x10] sm:$0xff] }
   0x2   :  { %v851_v3 = vpack.c.bf16 %v44_v1, %v43_v0  ;;  %v46_v4 = vld [vmem:[%s1154_s1 + $0x18] sm:$0xff]  ;;  %v27_v5 = vld [vmem:[%s1153_s0] sm:$0xff]  ;;  %v265_v8 = vld [vmem:[%s1156_s3 + $0x8] sm:$0xff] }
   0x3   :  { %v855_v6 = vpack.c.bf16 %v46_v4, %v45_v2  ;;  %752 = vmatprep.mubr.msk.f32.mxu1 %vm54_vm0, %v27_v5  ;;  %v264_v7 = vld [vmem:[%s1156_s3] sm:$0xff]  ;;  %v266_v9 = vld [vmem:[%s1156_s3 + $0x10] sm:$0xff]  ;;  %v267_v10 = vld [vmem:[%s1156_s3 + $0x18] sm:$0xff] }
   0x4   :  { %852 = vmatprep.subr.bf16.mxu1 %v851_v3  ;;  %v28_v11 = vld [vmem:[%s1153_s0 + $0x8] sm:$0xff]  ;;  %v859_v12 = vpack.c.bf16 %v265_v8, %v264_v7  ;;  %v29_v13 = vld [vmem:[%s1153_s0 + $0x10] sm:$0xff]  ;;  %v863_v14 = vpack.c.bf16 %v267_v10, %v266_v9 }
   0x5   :  { %854 = vmatpush3.bf16.msra.mxu1 %v851_v3 }
   0x6   :  { %856 = vmatprep.subr.bf16.mxu1 %v855_v6 }
   0x9   :  { %858 = vmatpush3.bf16.msra.mxu1 %v855_v6 }
   0xa   :  { %12 = vsyncpa [#allocation3], 0  ;;  %860 = vmatprep.subr.bf16.mxu1 %v859_v12  ;;  %v268_v15 = vld [vmem:[%s1156_s3 + $0x20] sm:$0xff]  ;;  %v269_v16 = vld [vmem:[%s1156_s3 + $0x28] sm:$0xff]  ;;  %vm279_vm1 = vcmask 523264   ;;  %vm938_vm2 = vmmov 0  }
   0xb   :  { %v30_v17 = vld [vmem:[%s1153_s0 + $0x18] sm:$0xff]  ;;  %v31_v18 = vld [vmem:[%s1153_s0 + $0x20] sm:$0xff]  ;;  %v867_v19 = vpack.c.bf16 %v269_v16, %v268_v15  ;;  %v270_v20 = vld [vmem:[%s1156_s3 + $0x30] sm:$0xff]  ;;  %s941_s12 = smov [#allocation2]  }
   0xc   :  { %753 = vmatmul.mubr.msk.f32.vlgmr.msra.gmra.mrb[0].mxu1 %vm54_vm0, %v28_v11  ;;  %v271_v21 = vld [vmem:[%s1156_s3 + $0x38] sm:$0xff]  ;;  %v32_v22 = vld [vmem:[%s1153_s0 + $0x28] sm:$0xff]  ;;  %v33_v23 = vld [vmem:[%s1153_s0 + $0x30] sm:$0xff]  ;;  %s624_s13 = sshll.u32 %s941_s12, 4  ;;  %s625_s13 = int_to_ptr.vmem [resolvable:$true] %s624_s13 }
   0xd   :  { %755 = vmatprep.mubr.msk.f32.mxu1 %vm54_vm0, %v29_v13  ;;  %862 = vmatpush3.bf16.msra.mxu1 %v859_v12  ;;  %v871_v24 = vpack.c.bf16 %v271_v21, %v270_v20  ;;  %v34_v25 = vld [vmem:[%s1153_s0 + $0x38] sm:$0xff]  ;;  %v35_v26 = vld [vmem:[%s1153_s0 + $0x40] sm:$0xff]  ;;  %v36_v27 = vld [vmem:[%s1153_s0 + $0x48] sm:$0xff]  ;;  %v939_v20 = vmov 0.0   ;;  %s913_s14 = scalar_lea.vmem %s625_s13, 128  ;;  %p918_p1 = scmp.lt.s32.totalorder %s625_s13, %s625_s13 }
   0xe   :  { %864 = vmatprep.subr.bf16.mxu1 %v863_v14  ;;  %v37_v28 = vld [vmem:[%s1153_s0 + $0x50] sm:$0xff]  ;;  %v38_v29 = vld [vmem:[%s1153_s0 + $0x58] sm:$0xff]  ;;  %v39_v30 = vld [vmem:[%s1153_s0 + $0x60] sm:$0xff]  ;;  %848 = vmatprep.mubr.msk.f32.mxu0 %vm938_vm2, %v939_v20  ;;  %p914_p0 = scmp.ne.s32.totalorder %s625_s13, %s913_s14  ;;  %p919_p2 = scmp.lt.s32.totalorder %s913_s14, %s913_s14 }
   0xf   :  { %v40_v31 = vld [vmem:[%s1153_s0 + $0x68] sm:$0xff]  ;;  %v41_v32 = vld [vmem:[%s1153_s0 + $0x70] sm:$0xff]  ;;  %v42_v33 = vld [vmem:[%s1153_s0 + $0x78] sm:$0xff] }
  0x10   :  { %756 = vmatmul.mubr.msk.f32.gmra.mrb[2].mxu1 %vm54_vm0, %v30_v17  ;;  %v632_v34 = vld [vmem:[%s1155_s2] ss:$0 sm:$0xff]  ;;  %vm1110_vm3 = vmpackc.low %vm54_vm0, %vm54_vm0  ;;  %p920_p3 = por %p919_p2, %p918_p1 }
  0x11   :  { %758 = vmatprep.mubr.msk.f32.mxu1 %vm54_vm0, %v31_v18  ;;  %866 = vmatpush3.bf16.msra.mxu1 %v863_v14  ;;  %v490_v21 = vld [vmem:[%s1159_s6] sm:$0xff] }
  0x12   :  { %868 = vmatprep.subr.bf16.mxu1 %v867_v19  ;;  %p921_p4 = pnand %p920_p3, %p914_p0 }
  0x14   :  { %759 = vmatmul.mubr.msk.f32.gmra.mrb[4].mxu1 %vm54_vm0, %v32_v22  ;;  %v940_v22 = vmov 0  }
  0x15   :  { %761 = vmatprep.mubr.msk.f32.mxu1 %vm54_vm0, %v33_v23  ;;  %870 = vmatpush3.bf16.msra.mxu1 %v867_v19  ;;  %v937_v19 = vmov 0.0|0.0   ;;  %v649_v23 = vld [vmem:[%s1157_s4] ss:$0 sm:$0xff] }
  0x16   :  { %872 = vmatprep.subr.bf16.mxu1 %v871_v24  ;;  %875 = vmatprep.subr.bf16.mxu0 %v937_v19 }
  0x17   :  { %912 = vset.pattern.permute.xlu0 %v940_v22 }
  0x18   :  { %762 = vmatmul.mubr.msk.f32.gmra.mrb[6].mxu1 %vm54_vm0, %v34_v25  ;;  %493 = vperm.xlu0 %912, %v490_v21  }
  0x19   :  { %764 = vmatprep.mubr.msk.f32.mxu1 %vm54_vm0, %v35_v26  ;;  %874 = vmatpush3.bf16.msra.mxu1 %v871_v24 }
  0x1c   :  { %765 = vmatmul.mubr.msk.f32.gmra.mrb[8].mxu1 %vm54_vm0, %v36_v27 }
  0x1d   :  { %767 = vmatprep.mubr.msk.f32.mxu1 %vm54_vm0, %v37_v28 }
  0x20   :  { %768 = vmatmul.mubr.msk.f32.gmra.mrb[10].mxu1 %vm54_vm0, %v38_v29 }
  0x21   :  { %770 = vmatprep.mubr.msk.f32.mxu1 %vm54_vm0, %v39_v30 }
  0x24   :  { %771 = vmatmul.mubr.msk.f32.gmra.mrb[12].mxu1 %vm54_vm0, %v40_v31 }
  0x25   :  { %773 = vmatprep.mubr.msk.f32.mxu1 %vm54_vm0, %v41_v32 }
  0x28   :  { %774 = vmatmul.mubr.msk.f32.gmra.mrb[14].mxu1 %vm54_vm0, %v42_v33 }
  0xdf   :  { %v754_v35 = vpop.f32.mrb[0].mxu1 }
  0xe0   :  { %v175_v36 = vadd.f32 %v754_v35, %v632_v34  ;;  %v169_v37 = vpop.f32.mrb[1].mxu1 }
  0xe1   :  { %v170_v38 = vadd.f32 %v632_v34, %v169_v37 }
  0xe2   :  { %v249_v41 = vmax.f32 %v175_v36, 0.0 }
  0xe3   :  { %v248_v39 = vmax.f32 %v170_v38, 0.0  ;;  %v757_v40 = vpop.f32.mrb[2].mxu1 }
  0xe4   :  { %v185_v42 = vadd.f32 %v757_v40, %v632_v34  ;;  %v179_v43 = vpop.f32.mrb[3].mxu1 }
  0xe5   :  { %v180_v44 = vadd.f32 %v632_v34, %v179_v43  ;;  %792 = vmatprep.mubr.msk.f32.mxu1 %vm279_vm1, %v248_v39 }
  0xe6   :  { %v251_v45 = vmax.f32 %v185_v42, 0.0  ;;  %793 = vmatmul.mubr.msk.f32.vlgmr.msra.gmra.mrb[16].mxu1 %vm279_vm1, %v249_v41 }
  0xe7   :  { %v250_v46 = vmax.f32 %v180_v44, 0.0  ;;  %v760_v47 = vpop.f32.mrb[4].mxu1 }
  0xe8   :  { %v195_v48 = vadd.f32 %v760_v47, %v632_v34  ;;  %v189_v49 = vpop.f32.mrb[5].mxu1 }
  0xe9   :  { %795 = vmatprep.mubr.msk.f32.mxu1 %vm279_vm1, %v250_v46  ;;  %v190_v50 = vadd.f32 %v632_v34, %v189_v49 }
  0xea   :  { %796 = vmatmul.mubr.msk.f32.gmra.mrb[18].mxu1 %vm279_vm1, %v251_v45  ;;  %v253_v51 = vmax.f32 %v195_v48, 0.0 }
  0xeb   :  { %v252_v52 = vmax.f32 %v190_v50, 0.0  ;;  %v763_v53 = vpop.f32.mrb[6].mxu1 }
  0xec   :  { %v205_v54 = vadd.f32 %v763_v53, %v632_v34  ;;  %v199_v55 = vpop.f32.mrb[7].mxu1 }
  0xed   :  { %798 = vmatprep.mubr.msk.f32.mxu1 %vm279_vm1, %v252_v52  ;;  %v200_v56 = vadd.f32 %v632_v34, %v199_v55 }
  0xee   :  { %799 = vmatmul.mubr.msk.f32.gmra.mrb[20].mxu1 %vm279_vm1, %v253_v51  ;;  %v255_v57 = vmax.f32 %v205_v54, 0.0 }
  0xef   :  { %v254_v58 = vmax.f32 %v200_v56, 0.0  ;;  %v766_v59 = vpop.f32.mrb[8].mxu1 }
  0xf0   :  { %v215_v60 = vadd.f32 %v766_v59, %v632_v34  ;;  %v209_v61 = vpop.f32.mrb[9].mxu1 }
  0xf1   :  { %801 = vmatprep.mubr.msk.f32.mxu1 %vm279_vm1, %v254_v58  ;;  %v210_v62 = vadd.f32 %v632_v34, %v209_v61 }
  0xf2   :  { %802 = vmatmul.mubr.msk.f32.gmra.mrb[22].mxu1 %vm279_vm1, %v255_v57  ;;  %v257_v63 = vmax.f32 %v215_v60, 0.0 }
  0xf3   :  { %v256_v0 = vmax.f32 %v210_v62, 0.0  ;;  %v769_v1 = vpop.f32.mrb[10].mxu1 }
  0xf4   :  { %v225_v2 = vadd.f32 %v769_v1, %v632_v34  ;;  %v219_v3 = vpop.f32.mrb[11].mxu1 }
  0xf5   :  { %804 = vmatprep.mubr.msk.f32.mxu1 %vm279_vm1, %v256_v0  ;;  %v220_v4 = vadd.f32 %v632_v34, %v219_v3 }
  0xf6   :  { %805 = vmatmul.mubr.msk.f32.gmra.mrb[24].mxu1 %vm279_vm1, %v257_v63  ;;  %v259_v5 = vmax.f32 %v225_v2, 0.0 }
  0xf7   :  { %v258_v6 = vmax.f32 %v220_v4, 0.0  ;;  %v772_v7 = vpop.f32.mrb[12].mxu1 }
  0xf8   :  { %v235_v8 = vadd.f32 %v772_v7, %v632_v34  ;;  %v229_v9 = vpop.f32.mrb[13].mxu1 }
  0xf9   :  { %807 = vmatprep.mubr.msk.f32.mxu1 %vm279_vm1, %v258_v6  ;;  %v230_v10 = vadd.f32 %v632_v34, %v229_v9 }
  0xfa   :  { %808 = vmatmul.mubr.msk.f32.gmra.mrb[26].mxu1 %vm279_vm1, %v259_v5  ;;  %v261_v11 = vmax.f32 %v235_v8, 0.0 }
  0xfb   :  { %v260_v12 = vmax.f32 %v230_v10, 0.0  ;;  %v775_v13 = vpop.f32.mrb[14].mxu1 }
  0xfc   :  { %v245_v14 = vadd.f32 %v775_v13, %v632_v34  ;;  %v239_v15 = vpop.f32.mrb[15].mxu1 }
  0xfd   :  { %810 = vmatprep.mubr.msk.f32.mxu1 %vm279_vm1, %v260_v12  ;;  %v240_v16 = vadd.f32 %v632_v34, %v239_v15 }
  0xfe   :  { %811 = vmatmul.mubr.msk.f32.gmra.mrb[28].mxu1 %vm279_vm1, %v261_v11  ;;  %v263_v17 = vmax.f32 %v245_v14, 0.0 }
  0xff   :  { %v262_v18 = vmax.f32 %v240_v16, 0.0 }
 0x101   :  { %813 = vmatprep.mubr.msk.f32.mxu1 %vm279_vm1, %v262_v18  ;;  %v494_v18 = vpop.permute.xlu0 %493 }
 0x102   :  { %814 = vmatmul.mubr.msk.f32.gmra.mrb[30].mxu1 %vm279_vm1, %v263_v17  ;;  %v489_v17 = vld [vmem:[%s1158_s5] sm:$0xff] }
 0x1b9   :  { %v794_v24 = vpop.f32.mrb[16].mxu1 }
 0x1ba   :  { %v400_v25 = vadd.f32 %v794_v24, %v649_v23  ;;  %v394_v26 = vpop.f32.mrb[17].mxu1 }
 0x1bb   :  { %v395_v27 = vadd.f32 %v649_v23, %v394_v26 }
 0x1bc   :  { %v474_v28 = vmax.f32 %v400_v25, 0.0 }
 0x1bd   :  { %v473_v29 = vmax.f32 %v395_v27, 0.0  ;;  %v797_v30 = vpop.f32.mrb[18].mxu1 }
 0x1be   :  { %v410_v31 = vadd.f32 %v797_v30, %v649_v23  ;;  %v404_v32 = vpop.f32.mrb[19].mxu1 }
 0x1bf   :  { %v876_v34 = vpack.c.bf16 %v474_v28, %v473_v29  ;;  %v405_v35 = vadd.f32 %v649_v23, %v404_v32 }
 0x1c0   :  { %v476_v36 = vmax.f32 %v410_v31, 0.0 }
 0x1c1   :  { %v475_v37 = vmax.f32 %v405_v35, 0.0  ;;  %878 = vmatpush3.bf16.xpose.msk.msra.mxu0 %vm1110_vm3, %v876_v34  ;;  %v800_v38 = vpop.f32.mrb[20].mxu1 }
 0x1c2   :  { %v420_v39 = vadd.f32 %v800_v38, %v649_v23  ;;  %v414_v40 = vpop.f32.mrb[21].mxu1  ;;  %879 = vmatprep.subr.bf16.mxu0 %v937_v19 }
 0x1c3   :  { %v880_v41 = vpack.c.bf16 %v476_v36, %v475_v37  ;;  %v415_v42 = vadd.f32 %v649_v23, %v414_v40 }
 0x1c4   :  { %v478_v43 = vmax.f32 %v420_v39, 0.0 }
 0x1c5   :  { %v477_v44 = vmax.f32 %v415_v42, 0.0  ;;  %v803_v45 = vpop.f32.mrb[22].mxu1 }
 0x1c6   :  { %v430_v46 = vadd.f32 %v803_v45, %v649_v23  ;;  %v424_v47 = vpop.f32.mrb[23].mxu1 }
 0x1c7   :  { %v884_v48 = vpack.c.bf16 %v478_v43, %v477_v44  ;;  %v425_v49 = vadd.f32 %v649_v23, %v424_v47 }
 0x1c8   :  { %v480_v50 = vmax.f32 %v430_v46, 0.0 }
 0x1c9   :  { %882 = vmatpush3.bf16.xpose.msk.msra.mxu0 %vm1110_vm3, %v880_v41  ;;  %v479_v51 = vmax.f32 %v425_v49, 0.0  ;;  %v806_v52 = vpop.f32.mrb[24].mxu1 }
 0x1ca   :  { %883 = vmatprep.subr.bf16.mxu0 %v937_v19  ;;  %v440_v53 = vadd.f32 %v806_v52, %v649_v23  ;;  %v434_v54 = vpop.f32.mrb[25].mxu1 }
 0x1cb   :  { %v888_v55 = vpack.c.bf16 %v480_v50, %v479_v51  ;;  %v435_v56 = vadd.f32 %v649_v23, %v434_v54 }
 0x1cc   :  { %v482_v57 = vmax.f32 %v440_v53, 0.0 }
 0x1cd   :  { %v481_v58 = vmax.f32 %v435_v56, 0.0  ;;  %v809_v59 = vpop.f32.mrb[26].mxu1 }
 0x1ce   :  { %v450_v60 = vadd.f32 %v809_v59, %v649_v23  ;;  %v444_v61 = vpop.f32.mrb[27].mxu1 }
 0x1cf   :  { %v892_v62 = vpack.c.bf16 %v482_v57, %v481_v58  ;;  %v445_v63 = vadd.f32 %v649_v23, %v444_v61 }
 0x1d0   :  { %v484_v0 = vmax.f32 %v450_v60, 0.0 }
 0x1d1   :  { %886 = vmatpush3.bf16.xpose.msk.msra.mxu0 %vm1110_vm3, %v884_v48  ;;  %v483_v1 = vmax.f32 %v445_v63, 0.0  ;;  %v812_v2 = vpop.f32.mrb[28].mxu1 }
 0x1d2   :  { %887 = vmatprep.subr.bf16.mxu0 %v937_v19  ;;  %v460_v3 = vadd.f32 %v812_v2, %v649_v23  ;;  %v454_v4 = vpop.f32.mrb[29].mxu1 }
 0x1d3   :  { %v896_v5 = vpack.c.bf16 %v484_v0, %v483_v1  ;;  %v455_v6 = vadd.f32 %v649_v23, %v454_v4 }
 0x1d4   :  { %v486_v7 = vmax.f32 %v460_v3, 0.0 }
 0x1d5   :  { %v485_v8 = vmax.f32 %v455_v6, 0.0  ;;  %v815_v9 = vpop.f32.mrb[30].mxu1 }
 0x1d6   :  { %v470_v10 = vadd.f32 %v815_v9, %v649_v23  ;;  %v464_v11 = vpop.f32.mrb[31].mxu1 }
 0x1d7   :  { %v900_v12 = vpack.c.bf16 %v486_v7, %v485_v8  ;;  %v465_v13 = vadd.f32 %v649_v23, %v464_v11 }
 0x1d8   :  { %v488_v14 = vmax.f32 %v470_v10, 0.0 }
 0x1d9   :  { %890 = vmatpush3.bf16.xpose.msk.msra.mxu0 %vm1110_vm3, %v888_v55  ;;  %v487_v15 = vmax.f32 %v465_v13, 0.0 }
 0x1da   :  { %891 = vmatprep.subr.bf16.mxu0 %v937_v19 }
 0x1db   :  { %v904_v16 = vpack.c.bf16 %v488_v14, %v487_v15 }
 0x1e1   :  { %894 = vmatpush3.bf16.xpose.msk.msra.mxu0 %vm1110_vm3, %v892_v62 }
 0x1e2   :  { %895 = vmatprep.subr.bf16.mxu0 %v937_v19 }
 0x1e9   :  { %898 = vmatpush3.bf16.xpose.msk.msra.mxu0 %vm1110_vm3, %v896_v5 }
 0x1ea   :  { %899 = vmatprep.subr.bf16.mxu0 %v937_v19 }
 0x1f1   :  { %902 = vmatpush3.bf16.xpose.msk.msra.mxu0 %vm1110_vm3, %v900_v12 }
 0x1f2   :  { %903 = vmatprep.subr.bf16.mxu0 %v937_v19 }
 0x1f9   :  { %906 = vmatpush3.bf16.xpose.msk.msra.mxu0 %vm1110_vm3, %v904_v16 }
 0x200   :  { %849 = vmatmul.mubr.msk.f32.vlgmr.msra.gmra.mrb[0].mxu0 %vm54_vm0, %v489_v17 }
 0x2d3   :  { %v613_v20 = vpop.f32.mrb[0].mxu0 }
 0x2d4   :  { %v614_v21 = vadd.f32 %v613_v20, %v494_v18  ;;  %v850_v22 = vpop.f32.mrb[1].mxu0 }
 0x2d6   :  { %617 = vst [vmem:[#allocation2] sm:$0xff] %v614_v21 }
 0x2d7   :  { %924 = shalt.err (!%p921_p4)
}
 0x2d8   :  { %s925_s5 = scalar_lea.hbm %s1160_s7, 128 }
 0x2d9   :  { %p926_p5 = scmp.ne.s32.totalorder %s1160_s7, %s925_s5  ;;  %p929_p6 = scmp.lt.u32.totalorder %s925_s5, %s1160_s7 }
 0x2db   :  { %p931_p7 = pnand %p929_p6, %p926_p5 }
 0x2dd   :  { %934 = shalt.err (!%p931_p7)
}
 0x2de   :  { %627 = dma.vmem_to_hbm [thread:$0]  %s625_s13, 128, %s1160_s7, [#allocation3]  }
 0x2df   :  { %935 = dma.done.wait [#allocation3], 128  }
 0x2e0   :  { %936 = vsyncadd [#allocation3], 4294967168 }
 0x2e1   :  { %631 = vsyncpa [#allocation3], 1 }

</bundles_post_ra>
